<compile_context>
chip_gen: v7x
topology: tpu7x:2x2x1
jax: 0.10.0
libtpu: 0.0.40
codegen_flags: <defaults>
</compile_context>

<pallas_src>
import jax
import jax.numpy as jnp
from jax.experimental import pallas as pl
from jax.experimental.pallas import tpu as pltpu


def mlp_kernel(x_ref, w1_ref, b1_ref, w2_ref, b2_ref, o_ref):
    # Layer 1 (packed): (R, 32k) @ (32k, 16k) on the MXU, f32 accumulation,
    # then bias + tanh on VPU/EUP with lane-dense operands.
    h = jnp.tanh(
        jnp.dot(x_ref[...], w1_ref[...], preferred_element_type=jnp.float32)
        + b1_ref[...]
    )
    # Layer 2 (packed): (R, 16k) @ (16k, k). The block-diagonal W2 performs the
    # per-sample 16-wide reduction without a degenerate N=1 MXU pass.
    out = jnp.dot(h, w2_ref[...], preferred_element_type=jnp.float32) + b2_ref[0, 0]
    o_ref[...] = out.astype(o_ref.dtype)


def _round_up(n, m):
    return ((n + m - 1) // m) * m


def modelP1_forward(x, w1, b1, w2, b2, *, pack=4, tile_rows=2048):
    """x: (B, 32) f32 -> (B, 1) f32.

    pack      : samples packed per vreg row (lane packing factor k).
    tile_rows : packed rows per grid step (so samples per tile = pack * tile_rows);
                2048 rows * 128 lanes * 4 B = 1 MiB per x tile, double-buffered
                2 MiB -> fits comfortably in v7x's smaller VMEM too.
    """
    B, d_in = x.shape
    d_hid = w1.shape[-1]
    k = pack

    rows_needed = max(1, -(-B // k))                  # ceil(B / k) packed rows
    R = min(tile_rows, _round_up(rows_needed, 8))     # packed rows per grid step
    num_tiles = -(-rows_needed // R)
    Bp = num_tiles * R * k                            # padded batch

    if Bp != B:
        x = jnp.pad(x, ((0, Bp - B), (0, 0)))
    x_p = x.reshape(Bp // k, d_in * k)                # free (contiguous) reshape

    eye_k = jnp.eye(k, dtype=w1.dtype)
    w1_p = jnp.kron(eye_k, w1)                        # (32k, 16k) block-diagonal
    b1_p = jnp.tile(b1.reshape(1, d_hid), (1, k))     # (1, 16k)
    w2_p = jnp.kron(eye_k, w2.reshape(d_hid, 1))      # (16k, k) block-diagonal
    b2_s = b2.reshape(1, 1)

    out_p = pl.pallas_call(
        mlp_kernel,
        out_shape=jax.ShapeDtypeStruct((Bp // k, k), x.dtype),
        grid_spec=pltpu.PrefetchScalarGridSpec(
            num_scalar_prefetch=0,
            grid=(num_tiles,),
            in_specs=[
                pl.BlockSpec((R, d_in * k), lambda i: (i, 0)),          # x: streamed
                pl.BlockSpec((d_in * k, d_hid * k), lambda i: (0, 0)),  # W1: resident
                pl.BlockSpec((1, d_hid * k), lambda i: (0, 0)),         # b1: resident
                pl.BlockSpec((d_hid * k, k), lambda i: (0, 0)),         # W2: resident
                pl.BlockSpec(memory_space=pltpu.MemorySpace.SMEM),      # b2: scalar
            ],
            out_specs=pl.BlockSpec((R, k), lambda i: (i, 0)),
        ),
        compiler_params=pltpu.CompilerParams(
            dimension_semantics=("parallel",),   # batch axis shards across TCs (v7x)
        ),
    )(x_p, w1_p, b1_p, w2_p, b2_s)

    # (Bp/k, k) -> (Bp, 1) is a free row-major reshape; drop the padded rows.
    return out_p.reshape(Bp, 1)[:B]


if __name__ == "__main__":
    key = jax.random.PRNGKey(0)
    k_x, k_w1, k_b1, k_w2, k_b2 = jax.random.split(key, 5)

    B, D_IN, D_HID, D_OUT = 8, 32, 16, 1

    # PyTorch shapes: Linear(32,16) -> W (16,32); we store the transpose (32,16)
    # for x @ W; same for Linear(16,1).
    x = jax.random.normal(k_x, (B, D_IN), dtype=jnp.float32)
    w1 = jax.random.normal(k_w1, (D_IN, D_HID), dtype=jnp.float32) * 0.1
    b1 = jax.random.normal(k_b1, (1, D_HID), dtype=jnp.float32) * 0.1
    w2 = jax.random.normal(k_w2, (D_HID, D_OUT), dtype=jnp.float32) * 0.1
    b2 = jax.random.normal(k_b2, (1, D_OUT), dtype=jnp.float32) * 0.1

    ref_fn = lambda xx: jnp.tanh(xx @ w1 + b1) @ w2 + b2

    # Test 1: small batch (exercises the padding path; single grid step).
    out = jax.block_until_ready(modelP1_forward(x, w1, b1, w2, b2))
    assert out.shape == (B, D_OUT)
    assert jnp.allclose(out, ref_fn(x), atol=1e-4, rtol=1e-4)

    # Test 2: non-aligned larger batch with a tiny tile -> multi-step grid,
    # resident weights reused across grid steps.
    B2 = 100
    x2 = jax.random.normal(jax.random.PRNGKey(1), (B2, D_IN), dtype=jnp.float32)
    out2 = jax.block_until_ready(
        modelP1_forward(x2, w1, b1, w2, b2, pack=4, tile_rows=8)
    )
    assert out2.shape == (B2, D_OUT)
    assert jnp.allclose(out2, ref_fn(x2), atol=1e-4, rtol=1e-4)

    print("KERNEL_OK")
</pallas_src>

<mosaic_0001>
module attributes {stable_mosaic.version = 11 : i64} {
  func.func @mlp_kernel(%arg0: i32, %arg1: memref<8x128xf32, #tpu.memory_space<vmem>>, %arg2: memref<128x64xf32, #tpu.memory_space<vmem>>, %arg3: memref<1x64xf32, #tpu.memory_space<vmem>>, %arg4: memref<64x4xf32, #tpu.memory_space<vmem>>, %arg5: memref<1x1xf32, #tpu.memory_space<smem>>, %arg6: memref<8x4xf32, #tpu.memory_space<vmem>>) attributes {dimension_semantics = [#tpu.dimension_semantics<parallel>], iteration_bounds = array<i64: 1>, scalar_prefetch = 0 : i64, scratch_operands = 0 : i64, tpu.core_type = #tpu.core_type<tc>, window_params = [{transform_indices = @transform_0, window_bounds = array<i64: 8, 128>}, {pipeline_mode = #tpu.pipeline_mode<synchronous>, transform_indices = @transform_1, window_bounds = array<i64: 128, 64>}, {pipeline_mode = #tpu.pipeline_mode<synchronous>, transform_indices = @transform_2, window_bounds = array<i64: 1, 64>}, {pipeline_mode = #tpu.pipeline_mode<synchronous>, transform_indices = @transform_3, window_bounds = array<i64: 64, 4>}, {transform_indices = @transform_4, window_bounds = array<i64: 1, 1>}, {transform_indices = @transform_5, window_bounds = array<i64: 8, 4>}]} {
    %c0 = arith.constant 0 : index
    %c0_0 = arith.constant 0 : index
    %0 = vector.load %arg1[%c0, %c0_0] : memref<8x128xf32, #tpu.memory_space<vmem>>, vector<8x128xf32>
    %c0_1 = arith.constant 0 : index
    %c0_2 = arith.constant 0 : index
    %1 = vector.load %arg2[%c0_1, %c0_2] : memref<128x64xf32, #tpu.memory_space<vmem>>, vector<128x64xf32>
    %cst = arith.constant dense<0.000000e+00> : vector<8x64xf32>
    %2 = tpu.matmul %0, %1, %cst {dimension_numbers = #tpu.dot_dimension_numbers<[1], [0], [0], [1], [0, 0, 1, 1], [], []>} : vector<8x128xf32>, vector<128x64xf32>, vector<8x64xf32> -> vector<8x64xf32>
    %c0_3 = arith.constant 0 : index
    %c0_4 = arith.constant 0 : index
    %3 = vector.load %arg3[%c0_3, %c0_4] : memref<1x64xf32, #tpu.memory_space<vmem>>, vector<1x64xf32>
    %4 = vector.broadcast %3 : vector<1x64xf32> to vector<8x64xf32>
    %5 = arith.addf %2, %4 : vector<8x64xf32>
    %6 = math.tanh %5 : vector<8x64xf32>
    %c0_5 = arith.constant 0 : index
    %c0_6 = arith.constant 0 : index
    %7 = vector.load %arg4[%c0_5, %c0_6] : memref<64x4xf32, #tpu.memory_space<vmem>>, vector<64x4xf32>
    %cst_7 = arith.constant dense<0.000000e+00> : vector<8x4xf32>
    %8 = tpu.matmul %6, %7, %cst_7 {dimension_numbers = #tpu.dot_dimension_numbers<[1], [0], [0], [1], [0, 0, 1, 1], [], []>} : vector<8x64xf32>, vector<64x4xf32>, vector<8x4xf32> -> vector<8x4xf32>
    %c0_8 = arith.constant 0 : index
    %c0_9 = arith.constant 0 : index
    %9 = memref.load %arg5[%c0_8, %c0_9] : memref<1x1xf32, #tpu.memory_space<smem>>
    %10 = vector.broadcast %9 : f32 to vector<8x4xf32>
    %11 = arith.addf %8, %10 : vector<8x4xf32>
    %c0_10 = arith.constant 0 : index
    %c0_11 = arith.constant 0 : index
    %12 = vector.load %arg6[%c0_10, %c0_11] : memref<8x4xf32, #tpu.memory_space<vmem>>, vector<8x4xf32>
    tpu.vector_store %arg6[%c0_10, %c0_11], %11 {strides = array<i32>} : memref<8x4xf32, #tpu.memory_space<vmem>>, vector<8x4xf32>,
    return
  }
  func.func @transform_0(%arg0: i32) -> (i32, i32) {
    %c0_i32 = arith.constant 0 : i32
    %c0_i32_0 = arith.constant 0 : i32
    return %arg0, %c0_i32 : i32, i32
  }
  func.func @transform_1(%arg0: i32) -> (i32, i32) {
    %c0_i32 = arith.constant 0 : i32
    %c0_i32_0 = arith.constant 0 : i32
    %c0_i32_1 = arith.constant 0 : i32
    return %c0_i32, %c0_i32_0 : i32, i32
  }
  func.func @transform_2(%arg0: i32) -> (i32, i32) {
    %c0_i32 = arith.constant 0 : i32
    %c0_i32_0 = arith.constant 0 : i32
    %c0_i32_1 = arith.constant 0 : i32
    return %c0_i32, %c0_i32_0 : i32, i32
  }
  func.func @transform_3(%arg0: i32) -> (i32, i32) {
    %c0_i32 = arith.constant 0 : i32
    %c0_i32_0 = arith.constant 0 : i32
    %c0_i32_1 = arith.constant 0 : i32
    return %c0_i32, %c0_i32_0 : i32, i32
  }
  func.func @transform_4(%arg0: i32) -> (i32, i32) {
    %c0_i32 = arith.constant 0 : i32
    %c0_i32_0 = arith.constant 0 : i32
    %c0_i32_1 = arith.constant 0 : i32
    return %c0_i32, %c0_i32_0 : i32, i32
  }
  func.func @transform_5(%arg0: i32) -> (i32, i32) {
    %c0_i32 = arith.constant 0 : i32
    %c0_i32_0 = arith.constant 0 : i32
    return %arg0, %c0_i32 : i32, i32
  }
}

</mosaic_0001>

<bundles_post_ra>
// kernel: tpu_custom_call.1
= control target key start
LH: loop header
LB: loop body
LE: loop exit
PB: predicated region body
PF: predicated region fallthrough
CT: control target
= control target key end

     0   :  { %v329_v0 = vmov 0.0|0.0   ;;  %vm330_vm0 = vmmov 0   ;;  %v331_v4 = vmov 0.0   ;;  %vm126_vm1 = vcmask 523264   ;;  %s458_s1 = inlined_call_operand.vmem [shape: f32[128,64], index: 1, kind: input, shape index: {}]   ;;  %s459_s3 = inlined_call_operand.vmem [shape: f32[64,4], index: 3, kind: input, shape index: {}]   ;;  %s460_s0 = inlined_call_operand.vmem [shape: f32[8,128], index: 0, kind: input, shape index: {}]   ;;  %s461_s2 = inlined_call_operand.vmem [shape: f32[1,64], index: 2, kind: input, shape index: {}]   ;;  %s462_s4 = inlined_call_operand.<no memory space> [shape: f32[1,1], index: 4, kind: input, shape index: {}]   ;;  %s463_s5 = inlined_call_operand.vmem [shape: f32[8,4], index: 5, kind: output, shape index: {}]  }
   0x1   :  { %288 = vmatprep.subr.bf16.mxu0 %v329_v0  ;;  %v22_v1 = vld [vmem:[%s458_s1] sm:$0xff]  ;;  %v23_v2 = vld [vmem:[%s458_s1 + $0x8] sm:$0xff]  ;;  %v24_v3 = vld [vmem:[%s458_s1 + $0x10] sm:$0xff]  ;;  %266 = vmatprep.mubr.msk.f32.mxu0 %vm330_vm0, %v331_v4  ;;  %v125_v44 = vstv %s462_s4  ;;  %vm200_vm2 = vcmask 31744  }
   0x2   :  { %v289_v5 = vpack.c.bf16 %v23_v2, %v22_v1  ;;  %v25_v6 = vld [vmem:[%s458_s1 + $0x18] sm:$0xff]  ;;  %312 = vmatprep.subr.bf16.mxu1 %v329_v0  ;;  %285 = vmatprep.mubr.msk.f32.mxu1 %vm330_vm0, %v331_v4  ;;  %v26_v8 = vld [vmem:[%s458_s1 + $0x20] sm:$0xff]  ;;  %v27_v9 = vld [vmem:[%s458_s1 + $0x28] sm:$0xff] }
   0x3   :  { %v292_v7 = vpack.c.bf16 %v25_v6, %v24_v3  ;;  %v116_v10 = vld [vmem:[%s459_s3] sm:$0xff]  ;;  %v117_v11 = vld [vmem:[%s459_s3 + $0x8] sm:$0xff]  ;;  %v295_v12 = vpack.c.bf16 %v27_v9, %v26_v8  ;;  %v28_v14 = vld [vmem:[%s458_s1 + $0x30] sm:$0xff] }
   0x4   :  { %290 = vmatpush3.bf16.msra.mxu0 %v289_v5  ;;  %v313_v13 = vpack.c.bf16 %v117_v11, %v116_v10  ;;  %v29_v15 = vld [vmem:[%s458_s1 + $0x38] sm:$0xff]  ;;  %v30_v17 = vld [vmem:[%s458_s1 + $0x40] sm:$0xff]  ;;  %v31_v18 = vld [vmem:[%s458_s1 + $0x48] sm:$0xff] }
   0x5   :  { %291 = vmatprep.subr.bf16.mxu0 %v329_v0  ;;  %v298_v16 = vpack.c.bf16 %v29_v15, %v28_v14  ;;  %v301_v19 = vpack.c.bf16 %v31_v18, %v30_v17  ;;  %v32_v20 = vld [vmem:[%s458_s1 + $0x50] sm:$0xff]  ;;  %v33_v21 = vld [vmem:[%s458_s1 + $0x58] sm:$0xff]  ;;  %v34_v23 = vld [vmem:[%s458_s1 + $0x60] sm:$0xff] }
   0x6   :  { %314 = vmatpush3.bf16.msra.mxu1 %v313_v13  ;;  %v304_v22 = vpack.c.bf16 %v33_v21, %v32_v20  ;;  %v35_v24 = vld [vmem:[%s458_s1 + $0x68] sm:$0xff]  ;;  %v36_v26 = vld [vmem:[%s458_s1 + $0x70] sm:$0xff]  ;;  %v37_v27 = vld [vmem:[%s458_s1 + $0x78] sm:$0xff] }
   0x7   :  { %315 = vmatprep.subr.bf16.mxu1 %v329_v0  ;;  %v307_v25 = vpack.c.bf16 %v35_v24, %v34_v23  ;;  %v310_v28 = vpack.c.bf16 %v37_v27, %v36_v26  ;;  %v21_v29 = vld [vmem:[%s460_s0] sm:$0xff]  ;;  %v118_v30 = vld [vmem:[%s459_s3 + $0x10] sm:$0xff]  ;;  %v119_v31 = vld [vmem:[%s459_s3 + $0x18] sm:$0xff] }
   0x8   :  { %293 = vmatpush3.bf16.msra.mxu0 %v292_v7  ;;  %v316_v32 = vpack.c.bf16 %v119_v31, %v118_v30  ;;  %v120_v33 = vld [vmem:[%s459_s3 + $0x20] sm:$0xff]  ;;  %v121_v34 = vld [vmem:[%s459_s3 + $0x28] sm:$0xff]  ;;  %v122_v36 = vld [vmem:[%s459_s3 + $0x30] sm:$0xff] }
   0x9   :  { %294 = vmatprep.subr.bf16.mxu0 %v329_v0  ;;  %v319_v35 = vpack.c.bf16 %v121_v34, %v120_v33  ;;  %v123_v37 = vld [vmem:[%s459_s3 + $0x38] sm:$0xff]  ;;  %v206_v39 = vld [vmem:[%s461_s2] ss:$0 sm:$0xff] }
   0xa   :  { %317 = vmatpush3.bf16.msra.mxu1 %v316_v32  ;;  %v322_v38 = vpack.c.bf16 %v123_v37, %v122_v36 }
   0xb   :  { %318 = vmatprep.subr.bf16.mxu1 %v329_v0 }
   0xc   :  { %296 = vmatpush3.bf16.msra.mxu0 %v295_v12 }
   0xd   :  { %297 = vmatprep.subr.bf16.mxu0 %v329_v0 }
   0xe   :  { %320 = vmatpush3.bf16.msra.mxu1 %v319_v35 }
   0xf   :  { %321 = vmatprep.subr.bf16.mxu1 %v329_v0 }
  0x10   :  { %299 = vmatpush3.bf16.msra.mxu0 %v298_v16 }
  0x11   :  { %300 = vmatprep.subr.bf16.mxu0 %v329_v0 }
  0x12   :  { %323 = vmatpush3.bf16.msra.mxu1 %v322_v38 }
  0x14   :  { %302 = vmatpush3.bf16.msra.mxu0 %v301_v19 }
  0x15   :  { %303 = vmatprep.subr.bf16.mxu0 %v329_v0 }
  0x18   :  { %305 = vmatpush3.bf16.msra.mxu0 %v304_v22 }
  0x19   :  { %306 = vmatprep.subr.bf16.mxu0 %v329_v0 }
  0x1c   :  { %308 = vmatpush3.bf16.msra.mxu0 %v307_v25 }
  0x1d   :  { %309 = vmatprep.subr.bf16.mxu0 %v329_v0 }
  0x20   :  { %311 = vmatpush3.bf16.msra.mxu0 %v310_v28 }
  0x23   :  { %267 = vmatmul.mubr.f32.vlgmr.msra.gmra.mrb[0].mxu0 %v21_v29 }
  0xf6   :  { %v111_v40 = vpop.f32.mrb[0].mxu0 }
  0xf7   :  { %v112_v41 = vadd.f32 %v206_v39, %v111_v40  ;;  %v268_v42 = vpop.f32.mrb[1].mxu0 }
  0xf9   :  { %327 = vtanh.f32 %v112_v41 }
 0x103   :  { %v328_v43 = vpop.eup %327 }
 0x104   :  { %286 = vmatmul.mubr.msk.f32.vlgmr.msra.gmra.mrb[0].mxu1 %vm126_vm1, %v328_v43 }
 0x1d7   :  { %v196_v45 = vpop.f32.mrb[0].mxu1 }
 0x1d8   :  { %v197_v46 = vadd.f32 %v196_v45, %v125_v44  ;;  %v287_v47 = vpop.f32.mrb[1].mxu1 }
 0x1da   :  { %201 = vst.msk [vmem:[%s463_s5] sm:$0xff] %vm200_vm2, %v197_v46 }

</bundles_post_ra>
